<compile_context>
chip_gen: v5e
topology: v5e:2x2
jax: 0.10.0
libtpu: 0.0.40
codegen_flags: <defaults>
</compile_context>

<pallas_src>
import jax
import jax.numpy as jnp
from jax import lax
from jax.experimental import pallas as pl
from jax.experimental.pallas import tpu as pltpu


def sinkhorn_softk_kernel(x_ref,
                          qw1_ref, qb1_ref, qw2_ref, qb2_ref,
                          kp_ref, pb1_ref, pw2_ref, pb2_ref,
                          out_ref):
    x = x_ref[...].astype(jnp.float32)

    # --- F.normalize(x, dim=1), folded into the first matmul ---
    # 1/max(||x||, 1e-12) == rsqrt(max(sum(x^2), 1e-24)); the scale is applied
    # to the (tb, hidden) matmul output instead of dividing the (tb, m) input.
    sumsq = jnp.sum(x * x, axis=1, keepdims=True)
    inv_norm = lax.rsqrt(jnp.maximum(sumsq, 1e-24))
    # TODO(synk): both dropouts are identity at inference (eval mode / prob=0).

    # --- q MLP: fc1 + relu + fc2 (bf16 MXU dots, f32 accumulate) ---
    xw = jnp.dot(x.astype(jnp.bfloat16), qw1_ref[...],
                 preferred_element_type=jnp.float32)
    h1 = jnp.maximum(xw * inv_norm + qb1_ref[...], 0.0)
    o = jnp.dot(h1.astype(jnp.bfloat16), qw2_ref[...],
                preferred_element_type=jnp.float32) + qb2_ref[...]

    # --- softmax over (padded) K; padded columns carry a -1e30 bias -> exp==0 ---
    o_max = jnp.max(o, axis=1, keepdims=True)
    e = jnp.exp(o - o_max)
    s = jnp.sum(e, axis=1, keepdims=True)
    r = pl.reciprocal(s, approx=True)
    r = r * (2.0 - s * r)              # one Newton step -> full f32 accuracy
    pi = e * r

    # --- p MLP with kemb @ p.fc1 pre-fused: h2 = relu(pi @ (kemb@pw1) + pb1) ---
    h2 = jnp.dot(pi.astype(jnp.bfloat16), kp_ref[...],
                 preferred_element_type=jnp.float32) + pb1_ref[...]
    h2 = jnp.maximum(h2, 0.0)
    logits = jnp.dot(h2.astype(jnp.bfloat16), pw2_ref[...],
                     preferred_element_type=jnp.float32) + pb2_ref[...]

    out_ref[...] = logits.astype(out_ref.dtype)


def _pick_batch_tile(B):
    # Prefer >= 4 grid steps (DMA pipelining + v7x megacore sharding) with a
    # tile that is a multiple of 8 sublanes and <= 1024 rows (VMEM-safe even
    # on v7x's 64 MiB with f32 per-tile intermediates).
    candidates = (1024, 512, 256, 128, 64, 32, 16, 8)
    for tb in candidates:
        if B % tb == 0 and B // tb >= 4:
            return tb
    for tb in candidates:
        if B % tb == 0:
            return tb
    return B  # odd/tiny batch: single full-extent block


def _prepare_params(params):
    """Pad K to a lane-dense multiple of 128, fuse kemb@pw1, cast weights bf16."""
    qw1, qb1 = params["qw1"], params["qb1"]
    qw2, qb2 = params["qw2"], params["qb2"]
    pw1, pb1 = params["pw1"], params["pb1"]
    pw2, pb2 = params["pw2"], params["pb2"]
    kemb = params["k_embedding"]

    K = qw2.shape[1]
    Kp = ((K + 127) // 128) * 128
    if Kp != K:
        pad = Kp - K
        qw2 = jnp.pad(qw2, ((0, 0), (0, pad)))                          # zero cols
        qb2 = jnp.pad(qb2, ((0, 0), (0, pad)), constant_values=-1e30)   # softmax -> 0
        kemb = jnp.pad(kemb, ((0, pad), (0, 0)))                        # zero rows

    # No nonlinearity between z = pi @ kemb and h2_pre = z @ pw1 -> fuse exactly.
    kp = jnp.dot(kemb, pw1, preferred_element_type=jnp.float32)         # (Kp, hidden_p)

    bf16 = jnp.bfloat16
    return dict(
        qw1=qw1.astype(bf16), qb1=qb1.astype(jnp.float32),
        qw2=qw2.astype(bf16), qb2=qb2.astype(jnp.float32),
        kp=kp.astype(bf16),   pb1=pb1.astype(jnp.float32),
        pw2=pw2.astype(bf16), pb2=pb2.astype(jnp.float32),
    )


def sinkhorn_softk_forward(x, params, *, batch_tile=None):
    """x: (B, m) float32.  params: dict from init_params.  Returns (logits, 0)."""
    B, m = x.shape
    tb = _pick_batch_tile(B) if batch_tile is None else batch_tile
    assert B % tb == 0, "batch_tile must divide the batch"

    p = _prepare_params(params)
    qw1, qb1, qw2, qb2 = p["qw1"], p["qb1"], p["qw2"], p["qb2"]
    kp, pb1, pw2, pb2 = p["kp"], p["pb1"], p["pw2"], p["pb2"]

    def full(a):  # whole (small) weight array, same block every grid step
        return pl.BlockSpec(a.shape, lambda i: (0, 0))

    out = pl.pallas_call(
        sinkhorn_softk_kernel,
        out_shape=jax.ShapeDtypeStruct((B, m), x.dtype),
        grid_spec=pltpu.PrefetchScalarGridSpec(
            num_scalar_prefetch=0,
            grid=(B // tb,),
            in_specs=[
                pl.BlockSpec((tb, m), lambda i: (i, 0)),   # x tile (pipelined)
                full(qw1), full(qb1), full(qw2), full(qb2),
                full(kp), full(pb1), full(pw2), full(pb2),
            ],
            out_specs=pl.BlockSpec((tb, m), lambda i: (i, 0)),
        ),
        compiler_params=pltpu.CompilerParams(
            dimension_semantics=("parallel",)),
    )(x, qw1, qb1, qw2, qb2, kp, pb1, pw2, pb2)
    # Forward returns (logits, 0)
    return out, 0


def xavier_uniform(key, fan_in, fan_out, dtype=jnp.float32):
    # nn.init.xavier_uniform_ on torch weight of shape (out, in); stored here as (in, out)
    a = jnp.sqrt(6.0 / (fan_in + fan_out)).astype(dtype)
    return jax.random.uniform(key, (fan_in, fan_out), dtype, minval=-a, maxval=a)


def init_params(key, p_dims, K):
    # p_dims = [z_dim, hidden, m]; q_dims = p_dims[::-1] = [m, hidden, z_dim]
    z_dim, hidden, m = p_dims
    q_dims = p_dims[::-1]
    keys = jax.random.split(key, 5)
    params = {
        # q: MLP(m, hidden, K)
        "qw1": xavier_uniform(keys[0], q_dims[0], q_dims[1]),
        "qb1": jnp.zeros((1, q_dims[1]), jnp.float32),
        "qw2": xavier_uniform(keys[1], q_dims[1], K),
        "qb2": jnp.zeros((1, K), jnp.float32),
        # p: MLP(z_dim, hidden, m)
        "pw1": xavier_uniform(keys[2], p_dims[0], p_dims[1]),
        "pb1": jnp.zeros((1, p_dims[1]), jnp.float32),
        "pw2": xavier_uniform(keys[3], p_dims[1], p_dims[2]),
        "pb2": jnp.zeros((1, p_dims[2]), jnp.float32),
        # nn.Embedding default init: N(0, 1)
        "k_embedding": jax.random.normal(keys[4], (K, z_dim), jnp.float32),
    }
    return params


def reference_forward(x, params):
    # Plain-JAX f32 reference matching the PyTorch module (eval mode).
    norm = jnp.sqrt(jnp.sum(x * x, axis=1, keepdims=True))
    h = x / jnp.maximum(norm, 1e-12)
    h1 = jnp.maximum(h @ params["qw1"] + params["qb1"], 0.0)
    o = h1 @ params["qw2"] + params["qb2"]
    pi = jax.nn.softmax(o, axis=1)
    z = pi @ params["k_embedding"]
    h2 = jnp.maximum(z @ params["pw1"] + params["pb1"], 0.0)
    return h2 @ params["pw2"] + params["pb2"]


if __name__ == "__main__":
    key = jax.random.PRNGKey(0)
    k_param, k_x = jax.random.split(key)

    # Small shapes: p_dims = [z_dim=32, hidden=64, m=128], K=16, batch=32
    p_dims = [32, 64, 128]
    K = 16
    batch = 32
    m = p_dims[2]

    params = init_params(k_param, p_dims, K)
    x = jax.random.normal(k_x, (batch, m), jnp.float32)

    # Default tile picker -> tb=8, grid=(4,): exercises the pipelined grid path.
    logits, zero = sinkhorn_softk_forward(x, params)
    logits = jax.block_until_ready(logits)

    ref = reference_forward(x, params)
    assert logits.shape == (batch, m)
    assert zero == 0
    # bf16 matmuls + reordered (but mathematically exact) normalization/fusion
    # => compare against the f32 reference with a modest tolerance.
    assert jnp.allclose(logits, ref, atol=2e-2, rtol=2e-2), "mismatch vs reference"
    print("KERNEL_OK")
</pallas_src>

<mosaic_0001>
module attributes {stable_mosaic.version = 11 : i64} {
  func.func @sinkhorn_softk_kernel(%arg0: i32, %arg1: memref<8x128xf32, #tpu.memory_space<vmem>>, %arg2: memref<128x64xbf16, #tpu.memory_space<vmem>>, %arg3: memref<1x64xf32, #tpu.memory_space<vmem>>, %arg4: memref<64x128xbf16, #tpu.memory_space<vmem>>, %arg5: memref<1x128xf32, #tpu.memory_space<vmem>>, %arg6: memref<128x64xbf16, #tpu.memory_space<vmem>>, %arg7: memref<1x64xf32, #tpu.memory_space<vmem>>, %arg8: memref<64x128xbf16, #tpu.memory_space<vmem>>, %arg9: memref<1x128xf32, #tpu.memory_space<vmem>>, %arg10: memref<8x128xf32, #tpu.memory_space<vmem>>) attributes {dimension_semantics = [#tpu.dimension_semantics<parallel>], iteration_bounds = array<i64: 4>, scalar_prefetch = 0 : i64, scratch_operands = 0 : i64, tpu.core_type = #tpu.core_type<tc>, window_params = [{transform_indices = @transform_0, window_bounds = array<i64: 8, 128>}, {pipeline_mode = #tpu.pipeline_mode<synchronous>, transform_indices = @transform_1, window_bounds = array<i64: 128, 64>}, {pipeline_mode = #tpu.pipeline_mode<synchronous>, transform_indices = @transform_2, window_bounds = array<i64: 1, 64>}, {pipeline_mode = #tpu.pipeline_mode<synchronous>, transform_indices = @transform_3, window_bounds = array<i64: 64, 128>}, {pipeline_mode = #tpu.pipeline_mode<synchronous>, transform_indices = @transform_4, window_bounds = array<i64: 1, 128>}, {pipeline_mode = #tpu.pipeline_mode<synchronous>, transform_indices = @transform_5, window_bounds = array<i64: 128, 64>}, {pipeline_mode = #tpu.pipeline_mode<synchronous>, transform_indices = @transform_6, window_bounds = array<i64: 1, 64>}, {pipeline_mode = #tpu.pipeline_mode<synchronous>, transform_indices = @transform_7, window_bounds = array<i64: 64, 128>}, {pipeline_mode = #tpu.pipeline_mode<synchronous>, transform_indices = @transform_8, window_bounds = array<i64: 1, 128>}, {transform_indices = @transform_9, window_bounds = array<i64: 8, 128>}]} {
    %c0 = arith.constant 0 : index
    %c0_0 = arith.constant 0 : index
    %0 = vector.load %arg1[%c0, %c0_0] : memref<8x128xf32, #tpu.memory_space<vmem>>, vector<8x128xf32>
    %1 = arith.mulf %0, %0 : vector<8x128xf32>
    %cst = arith.constant dense<0.000000e+00> : vector<8xf32>
    %2 = vector.multi_reduction <add>, %1, %cst [1] : vector<8x128xf32> to vector<8xf32>
    %3 = vector.shape_cast %2 : vector<8xf32> to vector<8x1xf32>
    %cst_1 = arith.constant 1.000000e-24 : f32
    %4 = vector.broadcast %cst_1 : f32 to vector<8x1xf32>
    %5 = arith.maximumf %3, %4 : vector<8x1xf32>
    %6 = math.rsqrt %5 : vector<8x1xf32>
    %7 = arith.truncf %0 : vector<8x128xf32> to vector<8x128xbf16>
    %c0_2 = arith.constant 0 : index
    %c0_3 = arith.constant 0 : index
    %8 = vector.load %arg2[%c0_2, %c0_3] : memref<128x64xbf16, #tpu.memory_space<vmem>>, vector<128x64xbf16>
    %cst_4 = arith.constant dense<0.000000e+00> : vector<8x64xf32>
    %9 = tpu.matmul %7, %8, %cst_4 {dimension_numbers = #tpu.dot_dimension_numbers<[1], [0], [0], [1], [0, 0, 1, 1], [], []>} : vector<8x128xbf16>, vector<128x64xbf16>, vector<8x64xf32> -> vector<8x64xf32>
    %10 = vector.broadcast %6 : vector<8x1xf32> to vector<8x64xf32>
    %11 = arith.mulf %9, %10 : vector<8x64xf32>
    %c0_5 = arith.constant 0 : index
    %c0_6 = arith.constant 0 : index
    %12 = vector.load %arg3[%c0_5, %c0_6] : memref<1x64xf32, #tpu.memory_space<vmem>>, vector<1x64xf32>
    %13 = vector.broadcast %12 : vector<1x64xf32> to vector<8x64xf32>
    %14 = arith.addf %11, %13 : vector<8x64xf32>
    %cst_7 = arith.constant 0.000000e+00 : f32
    %15 = vector.broadcast %cst_7 : f32 to vector<8x64xf32>
    %16 = arith.maximumf %14, %15 : vector<8x64xf32>
    %17 = arith.truncf %16 : vector<8x64xf32> to vector<8x64xbf16>
    %c0_8 = arith.constant 0 : index
    %c0_9 = arith.constant 0 : index
    %18 = vector.load %arg4[%c0_8, %c0_9] : memref<64x128xbf16, #tpu.memory_space<vmem>>, vector<64x128xbf16>
    %cst_10 = arith.constant dense<0.000000e+00> : vector<8x128xf32>
    %19 = tpu.matmul %17, %18, %cst_10 {dimension_numbers = #tpu.dot_dimension_numbers<[1], [0], [0], [1], [0, 0, 1, 1], [], []>} : vector<8x64xbf16>, vector<64x128xbf16>, vector<8x128xf32> -> vector<8x128xf32>
    %c0_11 = arith.constant 0 : index
    %c0_12 = arith.constant 0 : index
    %20 = vector.load %arg5[%c0_11, %c0_12] : memref<1x128xf32, #tpu.memory_space<vmem>>, vector<1x128xf32>
    %21 = vector.broadcast %20 : vector<1x128xf32> to vector<8x128xf32>
    %22 = arith.addf %19, %21 : vector<8x128xf32>
    %cst_13 = arith.constant dense<0xFF800000> : vector<8xf32>
    %23 = vector.multi_reduction <maximumf>, %22, %cst_13 [1] : vector<8x128xf32> to vector<8xf32>
    %24 = vector.shape_cast %23 : vector<8xf32> to vector<8x1xf32>
    %25 = vector.broadcast %24 : vector<8x1xf32> to vector<8x128xf32>
    %26 = arith.subf %22, %25 : vector<8x128xf32>
    %27 = math.exp %26 : vector<8x128xf32>
    %cst_14 = arith.constant dense<0.000000e+00> : vector<8xf32>
    %28 = vector.multi_reduction <add>, %27, %cst_14 [1] : vector<8x128xf32> to vector<8xf32>
    %29 = vector.shape_cast %28 : vector<8xf32> to vector<8x1xf32>
    %30 = tpu.reciprocal %29 {approx = true} : vector<8x1xf32> -> vector<8x1xf32>
    %31 = arith.mulf %29, %30 : vector<8x1xf32>
    %cst_15 = arith.constant 2.000000e+00 : f32
    %32 = vector.broadcast %cst_15 : f32 to vector<8x1xf32>
    %33 = arith.subf %32, %31 : vector<8x1xf32>
    %34 = arith.mulf %30, %33 : vector<8x1xf32>
    %35 = vector.broadcast %34 : vector<8x1xf32> to vector<8x128xf32>
    %36 = arith.mulf %27, %35 : vector<8x128xf32>
    %37 = arith.truncf %36 : vector<8x128xf32> to vector<8x128xbf16>
    %c0_16 = arith.constant 0 : index
    %c0_17 = arith.constant 0 : index
    %38 = vector.load %arg6[%c0_16, %c0_17] : memref<128x64xbf16, #tpu.memory_space<vmem>>, vector<128x64xbf16>
    %cst_18 = arith.constant dense<0.000000e+00> : vector<8x64xf32>
    %39 = tpu.matmul %37, %38, %cst_18 {dimension_numbers = #tpu.dot_dimension_numbers<[1], [0], [0], [1], [0, 0, 1, 1], [], []>} : vector<8x128xbf16>, vector<128x64xbf16>, vector<8x64xf32> -> vector<8x64xf32>
    %c0_19 = arith.constant 0 : index
    %c0_20 = arith.constant 0 : index
    %40 = vector.load %arg7[%c0_19, %c0_20] : memref<1x64xf32, #tpu.memory_space<vmem>>, vector<1x64xf32>
    %41 = vector.broadcast %40 : vector<1x64xf32> to vector<8x64xf32>
    %42 = arith.addf %39, %41 : vector<8x64xf32>
    %cst_21 = arith.constant 0.000000e+00 : f32
    %43 = vector.broadcast %cst_21 : f32 to vector<8x64xf32>
    %44 = arith.maximumf %42, %43 : vector<8x64xf32>
    %45 = arith.truncf %44 : vector<8x64xf32> to vector<8x64xbf16>
    %c0_22 = arith.constant 0 : index
    %c0_23 = arith.constant 0 : index
    %46 = vector.load %arg8[%c0_22, %c0_23] : memref<64x128xbf16, #tpu.memory_space<vmem>>, vector<64x128xbf16>
    %cst_24 = arith.constant dense<0.000000e+00> : vector<8x128xf32>
    %47 = tpu.matmul %45, %46, %cst_24 {dimension_numbers = #tpu.dot_dimension_numbers<[1], [0], [0], [1], [0, 0, 1, 1], [], []>} : vector<8x64xbf16>, vector<64x128xbf16>, vector<8x128xf32> -> vector<8x128xf32>
    %c0_25 = arith.constant 0 : index
    %c0_26 = arith.constant 0 : index
    %48 = vector.load %arg9[%c0_25, %c0_26] : memref<1x128xf32, #tpu.memory_space<vmem>>, vector<1x128xf32>
    %49 = vector.broadcast %48 : vector<1x128xf32> to vector<8x128xf32>
    %50 = arith.addf %47, %49 : vector<8x128xf32>
    %c0_27 = arith.constant 0 : index
    %c0_28 = arith.constant 0 : index
    %51 = vector.load %arg10[%c0_27, %c0_28] : memref<8x128xf32, #tpu.memory_space<vmem>>, vector<8x128xf32>
    tpu.vector_store %arg10[%c0_27, %c0_28], %50 {strides = array<i32>} : memref<8x128xf32, #tpu.memory_space<vmem>>, vector<8x128xf32>,
    return
  }
  func.func @transform_0(%arg0: i32) -> (i32, i32) {
    %c0_i32 = arith.constant 0 : i32
    %c0_i32_0 = arith.constant 0 : i32
    return %arg0, %c0_i32 : i32, i32
  }
  func.func @transform_1(%arg0: i32) -> (i32, i32) {
    %c0_i32 = arith.constant 0 : i32
    %c0_i32_0 = arith.constant 0 : i32
    %c0_i32_1 = arith.constant 0 : i32
    return %c0_i32, %c0_i32_0 : i32, i32
  }
  func.func @transform_2(%arg0: i32) -> (i32, i32) {
    %c0_i32 = arith.constant 0 : i32
    %c0_i32_0 = arith.constant 0 : i32
    %c0_i32_1 = arith.constant 0 : i32
    return %c0_i32, %c0_i32_0 : i32, i32
  }
  func.func @transform_3(%arg0: i32) -> (i32, i32) {
    %c0_i32 = arith.constant 0 : i32
    %c0_i32_0 = arith.constant 0 : i32
    %c0_i32_1 = arith.constant 0 : i32
    return %c0_i32, %c0_i32_0 : i32, i32
  }
  func.func @transform_4(%arg0: i32) -> (i32, i32) {
    %c0_i32 = arith.constant 0 : i32
    %c0_i32_0 = arith.constant 0 : i32
    %c0_i32_1 = arith.constant 0 : i32
    return %c0_i32, %c0_i32_0 : i32, i32
  }
  func.func @transform_5(%arg0: i32) -> (i32, i32) {
    %c0_i32 = arith.constant 0 : i32
    %c0_i32_0 = arith.constant 0 : i32
    %c0_i32_1 = arith.constant 0 : i32
    return %c0_i32, %c0_i32_0 : i32, i32
  }
  func.func @transform_6(%arg0: i32) -> (i32, i32) {
    %c0_i32 = arith.constant 0 : i32
    %c0_i32_0 = arith.constant 0 : i32
    %c0_i32_1 = arith.constant 0 : i32
    return %c0_i32, %c0_i32_0 : i32, i32
  }
  func.func @transform_7(%arg0: i32) -> (i32, i32) {
    %c0_i32 = arith.constant 0 : i32
    %c0_i32_0 = arith.constant 0 : i32
    %c0_i32_1 = arith.constant 0 : i32
    return %c0_i32, %c0_i32_0 : i32, i32
  }
  func.func @transform_8(%arg0: i32) -> (i32, i32) {
    %c0_i32 = arith.constant 0 : i32
    %c0_i32_0 = arith.constant 0 : i32
    %c0_i32_1 = arith.constant 0 : i32
    return %c0_i32, %c0_i32_0 : i32, i32
  }
  func.func @transform_9(%arg0: i32) -> (i32, i32) {
    %c0_i32 = arith.constant 0 : i32
    %c0_i32_0 = arith.constant 0 : i32
    return %arg0, %c0_i32 : i32, i32
  }
}

</mosaic_0001>

<bundles_post_ra>
// kernel: tpu_custom_call.1
= control target key start
LH: loop header
LB: loop body
LE: loop exit
PB: predicated region body
PF: predicated region fallthrough
CT: control target
= control target key end

     0   :  { %s1173_s0 = inlined_call_operand.vmem [shape: f32[32,128], index: 0, kind: input, shape index: {}]   ;;  %s1174_s1 = inlined_call_operand.vmem [shape: bf16[128,64], index: 1, kind: input, shape index: {}]   ;;  %s1175_s2 = inlined_call_operand.vmem [shape: f32[1,64], index: 2, kind: input, shape index: {}]   ;;  %s1176_s3 = inlined_call_operand.vmem [shape: bf16[64,128], index: 3, kind: input, shape index: {}]   ;;  %s1177_s4 = inlined_call_operand.vmem [shape: f32[1,128], index: 4, kind: input, shape index: {}]   ;;  %s1178_s5 = inlined_call_operand.vmem [shape: bf16[128,64], index: 5, kind: input, shape index: {}]   ;;  %s1179_s6 = inlined_call_operand.vmem [shape: f32[1,64], index: 6, kind: input, shape index: {}]   ;;  %s1180_s7 = inlined_call_operand.vmem [shape: bf16[64,128], index: 7, kind: input, shape index: {}]   ;;  %s1181_s8 = inlined_call_operand.vmem [shape: f32[1,128], index: 8, kind: input, shape index: {}]   ;;  %s1182_s9 = inlined_call_operand.hbm [shape: f32[32,128], index: 9, kind: output, shape index: {}]  }
   0x1   :  { %1183 = sst [smem:[#allocation5_spill]] %s1173_s0 }
   0x2   :  { %14 = vsyncpa [#allocation3], 0 }
   0x3   :  { %16 = vsyncpa [#allocation3 + $0x1], 0  ;;  %s1002_s30 = smov 0   ;;  %s1004_s10 = smov 0  }
   0x4   :  { %s1006_s11 = smov 0   ;;  %s1008_s12 = smov 0  }
   0x5 LB: > { %s1023_s13 = sadd.s32 4294967295, %s950_s12   ;;  %s707_s14 = sadd.s32 4294967294, %s950_s12   ;;  %s950_s12 = sphi %s1008_s12, %s1190_s12   ;;  %s946_s11 = sphi %s1006_s11, %s1189_s11   ;;  %s942_s10 = sphi %s1004_s10, %s1188_s10   ;;  %s938_s30 = sphi %s1002_s30, %s1187_s30  }
   0x6   : > { %s1027_s15 = sadd.s32 1, %s950_s12   ;;  %s223_s16 = sadd.s32 1, %s946_s11 }
   0x7   : > { %s220_s17 = ssub.s32 %s950_s12, %s1027_s15  ;;  %p233_p0 = scmp.ne.s32.totalorder %s946_s11, %s942_s10 }
   0x8   : > { %p221_p1 = scmp.eq.s32.totalorder %s220_s17, 0  ;;  %p234_p2 = scmp.eq.s32.totalorder %s1023_s13, 3 }
   0x9   : > { %p239_p3 = scmp.ne.s32.totalorder %s942_s10, %s938_s30  ;;  %p240_p4 = scmp.eq.s32.totalorder %s707_s14, 3 }
   0xa   : > { %s1038_s18 = scalar_select %p221_p1, %s946_s11, %s223_s16  }
   0xb   : > { %p1040_p5 = por %p234_p2, %p233_p0  ;;  %p1044_p6 = por %p240_p4, %p239_p3 }
   0xc   : > { %p710_p7 = scmp.ge.s32.totalorder %s950_s12, 1  ;;  %p289_p8 = scmp.lt.s32.totalorder %s950_s12, 5 }
   0xe   : > { %p290_p9 = pnand %p710_p7, %p289_p8 }
   0xf   : > { %p324_p10 = scmp.lt.s32.totalorder (!%p290_p9), %s1023_s13, 3  ;;  %s1186_s0 = sld [smem:[#allocation5_spill]] (!%p290_p9) }
  0x10   : > { %293 = sbr.rel (%p290_p9) target bundleno = 853 (0x355), region = 56  ;;  %s321_s17 = sand.u32 (!%p290_p9), 1, %s942_s10  }
  0x11   : > { %s812_s21 = sshll.u32 (!%p290_p9), %s1023_s13, 3  ;;  %s711_s22 = sshll.u32 (!%p290_p9), %s321_s17, 3 }
  0x12   : > { %s323_s28 = scalar_lea.vmem (!%p290_p9), [#allocation2], %s711_s22  ;;  %s633_s16 = scalar_lea.sflag (!%p290_p9), [#allocation3], %s321_s17 }
  0x13   : > { %s908_s24 = scalar_lea.hbm (!%p290_p9), %s1182_s9, 32 }
  0x15   : > { %v822_v0 = vld [vmem:[%s1174_s1 + $0x38] sm:$0xff]  ;;  %v821_v1 = vld [vmem:[%s1174_s1 + $0x30] sm:$0xff]  ;;  %s325_s25 = scalar_select %p324_p10, %s1023_s13, 3  ;;  %v820_v3 = vld [vmem:[%s1174_s1 + $0x28] sm:$0xff]  ;;  %vm466_vm3 = vcmask 523264  }
  0x16   : > { %409 = vmatpush.bf16.msra.mxu0 %v822_v0  ;;  %v819_v5 = vld [vmem:[%s1174_s1 + $0x20] sm:$0xff]  ;;  %v818_v6 = vld [vmem:[%s1174_s1 + $0x18] sm:$0xff]  ;;  %v817_v7 = vld [vmem:[%s1174_s1 + $0x10] sm:$0xff] }
  0x17   : > { %s712_s26 = sshll.u32 %s325_s25, 3  ;;  %v816_v8 = vld [vmem:[%s1174_s1 + $0x8] sm:$0xff]  ;;  %v815_v9 = vld [vmem:[%s1174_s1] sm:$0xff]  ;;  %v826_v11 = vld [vmem:[%s1176_s3 + $0x18] sm:$0xff]  ;;  %s643_s25 = scalar_lea.hbm %s1182_s9, %s812_s21 }
  0x18   : > { %s327_s29 = scalar_lea.vmem %s1186_s0, %s712_s26  ;;  %474 = vmatpush.bf16.msra.mxu1 %v826_v11  ;;  %v825_v12 = vld [vmem:[%s1176_s3 + $0x10] sm:$0xff]  ;;  %v824_v15 = vld [vmem:[%s1176_s3 + $0x8] sm:$0xff]  ;;  %v823_v16 = vld [vmem:[%s1176_s3] sm:$0xff]  ;;  %s647_s14 = sshll.u32 %s643_s25, 4  ;;  %s648_s14 = int_to_ptr.hbm [resolvable:$true] %s647_s14 }
  0x19   : > { %v329_v2 = vld [vmem:[%s327_s29] sm:$0xff]  ;;  %v834_v35 = vld [vmem:[%s1178_s5 + $0x38] sm:$0xff]  ;;  %v833_v36 = vld [vmem:[%s1178_s5 + $0x30] sm:$0xff]  ;;  %s645_s29 = sshll.u32 %s323_s28, 4  ;;  %s902_s13 = sshra.s32 %s648_s14, 4  ;;  %s646_s29 = int_to_ptr.vmem [resolvable:$true] %s645_s29  ;;  %s903_s13 = int_to_ptr.hbm [resolvable:$true] %s902_s13 }
  0x1a   : > { %410 = vmatpush.bf16.msra.mxu0 %v821_v1  ;;  %v330_v4 = vmul.f32 %v329_v2, %v329_v2  ;;  %v344_v10 = vpack.c.bf16 %v329_v2, %v329_v2  ;;  %v878_v23 = vld [vmem:[%s1175_s2] ss:$0 sm:$0xff]  ;;  %564 = vmatpush.bf16.msra.mxu2 %v834_v35  ;;  %v832_v37 = vld [vmem:[%s1178_s5 + $0x28] sm:$0xff]  ;;  %v830_v43 = vld [vmem:[%s1178_s5 + $0x18] sm:$0xff]  ;;  %s904_s0 = scalar_lea.hbm %s903_s13, 8  ;;  %p909_p0 = scmp.lt.s32.totalorder %s903_s13, %s1182_s9 }
  0x1b   : > { %v879_v31 = vld [vmem:[%s1177_s4] ss:$0 sm:$0xff]  ;;  %v829_v44 = vld [vmem:[%s1178_s5 + $0x10] sm:$0xff]  ;;  %v828_v45 = vld [vmem:[%s1178_s5 + $0x8] sm:$0xff]  ;;  %p905_p11 = scmp.ne.s32.totalorder %s903_s13, %s904_s0  ;;  %p910_p1 = scmp.lt.s32.totalorder %s908_s24, %s904_s0 }
  0x1c   : > { %331 = vadd.xlane.f32.xlu0 %v330_v4  ;;  %475 = vmatpush.bf16.msra.mxu1 %v825_v12  ;;  %v831_v38 = vld [vmem:[%s1178_s5 + $0x20] sm:$0xff]  ;;  %v838_v47 = vld [vmem:[%s1180_s7 + $0x18] sm:$0xff]  ;;  %v837_v48 = vld [vmem:[%s1180_s7 + $0x10] sm:$0xff] }
  0x1d   : > { %v827_v46 = vld [vmem:[%s1178_s5] sm:$0xff]  ;;  %622 = vmatpush.bf16.msra.mxu3 %v838_v47  ;;  %v836_v56 = vld [vmem:[%s1180_s7 + $0x8] sm:$0xff]  ;;  %p906_p12 = pnand %p905_p11, %p1040_p5  ;;  %p911_p2 = por %p910_p1, %p909_p0 }
  0x1e   : > { %411 = vmatpush.bf16.msra.mxu0 %v820_v3  ;;  %565 = vmatpush.bf16.msra.mxu2 %v833_v36  ;;  %v835_v57 = vld [vmem:[%s1180_s7] sm:$0xff] }
  0x1f   : > { %v880_v58 = vld [vmem:[%s1179_s6] ss:$0 sm:$0xff]  ;;  %p907_p13 = pneg %p906_p12 }
  0x20   : > { %476 = vmatpush.bf16.msra.mxu1 %v824_v15  ;;  %v881_v0 = vld [vmem:[%s1181_s8] ss:$0 sm:$0xff] }
  0x21   : > { %623 = vmatpush.bf16.msra.mxu3 %v837_v48  ;;  %p912_p3 = pnand %p911_p2, %p907_p13 }
  0x22   : > { %412 = vmatpush.bf16.msra.mxu0 %v819_v5  ;;  %566 = vmatpush.bf16.msra.mxu2 %v832_v37 }
  0x24   : > { %477 = vmatpush.bf16.msra.mxu1 %v823_v16 }
  0x25   : > { %624 = vmatpush.bf16.msra.mxu3 %v836_v56 }
  0x26   : > { %413 = vmatpush.bf16.msra.mxu0 %v818_v6  ;;  %567 = vmatpush.bf16.msra.mxu2 %v831_v38 }
  0x29   : > { %625 = vmatpush.bf16.msra.mxu3 %v835_v57 }
  0x2a   : > { %414 = vmatpush.bf16.msra.mxu0 %v817_v7  ;;  %568 = vmatpush.bf16.msra.mxu2 %v830_v43 }
  0x2e   : > { %415 = vmatpush.bf16.msra.mxu0 %v816_v8  ;;  %569 = vmatpush.bf16.msra.mxu2 %v829_v44 }
  0x32   : > { %416 = vmatpush.bf16.msra.mxu0 %v815_v9  ;;  %570 = vmatpush.bf16.msra.mxu2 %v828_v45 }
  0x35   : > { %417 = vmatmul.bf16.vlgmr.msra.gmra.mxu0 %v344_v10 }
  0x36   : > { %571 = vmatpush.bf16.msra.mxu2 %v827_v46 }
  0x8f   : > { %v332_v13 = vpop.xlane.xlu0 %331 }
  0x90   : > { %v333_v14 = vmax.f32 %v332_v13, 1e-24 }
  0x92   : > { %882 = vrsqrt.f32 %v333_v14  ;;  %vm340_vm0 = vweird.f32 %v333_v14 }
  0x98   : > { %v883_v17 = vpop.eup %882 }
  0x99   : > { %v335_v18 = vmul.f32 %v883_v17, %v333_v14  ;;  %vm341_vm1 = vweird.f32 %v883_v17 }
  0x9a   : > { %vm342_vm2 = vmor %vm340_vm0, %vm341_vm1 }
  0x9b   : > { %v336_v19 = vmul.f32 %v883_v17, %v335_v18 }
  0x9d   : > { %v337_v20 = vmul.f32 0.5, %v336_v19 }
  0x9f   : > { %v338_v21 = vsub.f32 1.5, %v337_v20 }
  0xa1   : > { %v339_v22 = vmul.f32 %v883_v17, %v338_v21 }
  0xa3   : > { %v343_v24 = vsel %vm342_vm2, %v883_v17, %v339_v22 }
  0xb2   : > { %v418_v25 = vpop.f32.mrf.mxu0 }
  0xb3   : > { %v422_v26 = vmul.f32 %v418_v25, %v343_v24 }
  0xb5   : > { %v427_v27 = vadd.f32 %v878_v23, %v422_v26 }
  0xb7   : > { %v428_v28 = vmax.f32 %v427_v27, 0.0 }
  0xb9   : > { %v429_v29 = vpack.c.bf16 %v428_v28, %v428_v28 }
  0xba   : > { %v420_v30 = vpop.f32.mrf.mxu0 }
  0xbb   : > { %761 = vmatmul.msk.bf16.vlgmr.msra.gmra.mxu1 %vm466_vm3, %v429_v29 }
 0x138   : > { %v479_v32 = vpop.f32.mrf.mxu1 }
 0x139   : > { %v480_v33 = vadd.f32 %v879_v31, %v479_v32 }
 0x13b   : > { %483 = vmax.xlane.f32.xlu0 %v480_v33 }
 0x140   : > { %v481_v34 = vpop.f32.mrf.mxu1 }
 0x1ae   : > { %v484_v39 = vpop.xlane.xlu0 %483 }
 0x1af   : > { %v485_v40 = vsub.f32 %v480_v33, %v484_v39 }
 0x1b1   : > { %v486_v41 = vmul.f32 1.442695, %v485_v40 }
 0x1b3   : > { %884 = vpow2.f32 %v486_v41 }
 0x1b9   : > { %v885_v42 = vpop.eup %884 }
 0x1ba   : > { %488 = vadd.xlane.f32.xlu1 %v885_v42 }
 0x22d   : > { %v489_v49 = vpop.xlane.xlu1 %488 }
 0x22e   : > { %886 = vrcp.f32 %v489_v49 }
 0x234   : > { %v887_v50 = vpop.eup %886 }
 0x235   : > { %v491_v51 = vmul.f32 %v887_v50, %v489_v49 }
 0x237   : > { %v492_v52 = vsub.f32 2.0, %v491_v51 }
 0x239   : > { %v493_v53 = vmul.f32 %v887_v50, %v492_v52 }
 0x23b   : > { %v494_v54 = vmul.f32 %v885_v42, %v493_v53 }
 0x23d   : > { %v495_v55 = vpack.c.bf16 %v494_v54, %v494_v54 }
 0x23f   : > { %572 = vmatmul.bf16.vlgmr.msra.gmra.mxu2 %v495_v55 }
 0x2c2   : > { %v573_v59 = vpop.f32.mrf.mxu2 }
 0x2c3   : > { %v574_v60 = vadd.f32 %v880_v58, %v573_v59 }
 0x2c5   : > { %v577_v61 = vmax.f32 %v574_v60, 0.0 }
 0x2c7   : > { %v578_v62 = vpack.c.bf16 %v577_v61, %v577_v61 }
 0x2c9   : > { %810 = vmatmul.msk.bf16.vlgmr.msra.gmra.mxu3 %vm466_vm3, %v578_v62 }
 0x2ca   : > { %v575_v63 = vpop.f32.mrf.mxu2 }
 0x34c   : > { %v627_v1 = vpop.f32.mrf.mxu3 }
 0x34d   : > { %v628_v2 = vadd.f32 %v881_v0, %v627_v1 }
 0x34f   : > { %631 = vst [vmem:[%s323_s28] sm:$0xff] %v628_v2 }
 0x350   : > { %915 = shalt.err (!%p912_p3)
}
 0x351   : > { %839 = dma.vmem_to_hbm [thread:$0]  (%p1040_p5), %s646_s29, 128, %s648_s14, %s633_s16  }
 0x354   : > { %v629_v3 = vpop.f32.mrf.mxu3 }
 0x355 PF: > { %p845_p4 = scmp.ge.s32.totalorder %s950_s12, 2  ;;  %s659_s17 = sand.u32 1, %s938_s30  }
 0x356   : > { %s660_s25 = scalar_lea.sflag [#allocation3], %s659_s17 }
 0x357   : > { %p842_p7 = pnand %p845_p4, %p1044_p6 }
 0x359   : > { %p843_p8 = pneg %p842_p7 }
 0x35b   : > { %933 = dma.done.wait (%p843_p8), %s660_s25, 128  }
 0x35c   : > { %935 = vsyncadd (%p843_p8), %s660_s25, 4294967168  ;;  %p19_p9 = scmp.ge.s32.totalorder %s1027_s15, 6   ;;  %s1187_s30 = smov %s942_s10 }
 0x35d   : > { %s1188_s10 = smov %s946_s11  ;;  %s1189_s11 = smov %s1038_s18 }
 0x35e   : > { %s1190_s12 = smov %s1027_s15  ;;  %21 = sbr.rel (!%p19_p9) target bundleno = 5 (0x5), region = 91 }
 0x363   :  { %666 = vsyncpa [#allocation3], 1 }
 0x364   :  { %668 = vsyncpa [#allocation3 + $0x1], 1 }

</bundles_post_ra>
